<compile_context>
chip_gen: v5e
topology: v5e:2x2
jax: 0.10.0
libtpu: 0.0.40
codegen_flags: <defaults>
</compile_context>

<pallas_src>
import functools

import jax
import jax.numpy as jnp
from jax.experimental import pallas as pl
from jax.experimental.pallas import tpu as pltpu


# ----------------------------------------------------------------------------
# Kernel
# ----------------------------------------------------------------------------
def _actor_kernel(x_ref,
                  wf_ref, b1_ref,
                  w2_ref, b2_ref,
                  w3_ref, b3_ref,
                  wo_ref, bout_ref,
                  out_ref,
                  *, max_action, hidden):
    x = x_ref[...]                                            # [TB, in_full]

    # Fused fc1 + skip_layer: one MXU matmul sharing the tiny-K LHS x.
    # Columns [0:hidden] -> fc1 pre-activation, [hidden:] -> skip term.
    fused = jnp.dot(x, wf_ref[...], preferred_element_type=jnp.float32)
    skip = fused[:, hidden:]                                  # f32, [TB, act_pad]
    h = jnp.maximum(fused[:, :hidden] + b1_ref[...], 0.0).astype(x.dtype)

    # fc2 / fc3: MXU matmuls with f32 accumulation; bias + relu in f32, cast
    # back to the compute dtype only to feed the next matmul.
    h = jnp.dot(h, w2_ref[...], preferred_element_type=jnp.float32) + b2_ref[...]
    h = jnp.maximum(h, 0.0).astype(x.dtype)
    h = jnp.dot(h, w3_ref[...], preferred_element_type=jnp.float32) + b3_ref[...]
    h = jnp.maximum(h, 0.0).astype(x.dtype)

    # action_out(h) + skip + (bo + bs), all padded to 128 lanes.
    logits = (jnp.dot(h, wo_ref[...], preferred_element_type=jnp.float32)
              + skip + bout_ref[...])
    out_ref[...] = (max_action * jnp.tanh(logits)).astype(out_ref.dtype)


# ----------------------------------------------------------------------------
# One-time parameter preparation (hoisted out of the per-call path)
# ----------------------------------------------------------------------------
def _round_up(n, m):
    return ((n + m - 1) // m) * m


def prepare_params(params, *, goal_dim, compute_dtype=jnp.bfloat16):
    """Fold the achieved-goal trim into the weights, fuse fc1+skip, pad the
    output layers to 128 lanes, and cast to the MXU compute dtype.  Call ONCE
    and reuse the result for every forward call."""
    w1, b1, w2, b2, w3, b3, wo, bo, ws, bs = params
    in_dim, hidden = w1.shape                 # trim_ag: in_dim = obs + goal
    in_full = in_dim + goal_dim               # raw input carries achieved goal too
    act_dim = wo.shape[1]
    act_pad = _round_up(max(act_dim, 128), 128)   # lane-dense output width
    wd = compute_dtype

    # Fused fc1 + skip weight: zero rows for the trailing achieved-goal features
    # (so the kernel consumes full input rows), zero lanes for act padding.
    wf = jnp.zeros((in_full, hidden + act_pad), wd)
    wf = wf.at[:in_dim, :hidden].set(w1.astype(wd))
    wf = wf.at[:in_dim, hidden:hidden + act_dim].set(ws.astype(wd))

    wo_p = jnp.zeros((hidden, act_pad), wd).at[:, :act_dim].set(wo.astype(wd))
    b_out = jnp.zeros((1, act_pad), jnp.float32).at[:, :act_dim].set(
        (bo + bs).astype(jnp.float32).reshape(1, -1))

    return dict(
        wf=wf,
        b1=b1.astype(jnp.float32).reshape(1, -1),
        w2=w2.astype(wd), b2=b2.astype(jnp.float32).reshape(1, -1),
        w3=w3.astype(wd), b3=b3.astype(jnp.float32).reshape(1, -1),
        wo=wo_p, b_out=b_out,
        hidden=hidden, act_dim=act_dim, act_pad=act_pad,
        in_full=in_full, compute_dtype=wd,
    )


# ----------------------------------------------------------------------------
# Batch-tile sizing (per TPU generation)
# ----------------------------------------------------------------------------
_MAX_BLOCK_B = 2048   # keeps per-step working set inside default scoped VMEM everywhere


def _num_parallel_tensorcores():
    """TensorCores a 'parallel' grid axis is sharded across on one device."""
    try:
        kind = jax.devices()[0].device_kind.lower()
    except Exception:
        return 1
    # v7x exposes 2 TCs per chip; v4 is a megacore pair.  v5e/v6e are single-TC.
    return 2 if ("v7" in kind or "7x" in kind or "v4" in kind) else 1


def _pick_block_b(batch):
    n_tc = _num_parallel_tensorcores()
    steps = max(n_tc, pl.cdiv(batch, _MAX_BLOCK_B))
    if n_tc > 1:
        steps = _round_up(steps, n_tc)          # balanced load across TensorCores
    bb = _round_up(pl.cdiv(batch, steps), 16)   # bf16 packs two rows per sublane
    if bb >= 256:
        bb = _round_up(bb, 256)                 # align M to MXU height (v6e/v7x)
    return min(bb, _round_up(_MAX_BLOCK_B, 256))


# ----------------------------------------------------------------------------
# Forward wrapper
# ----------------------------------------------------------------------------
def value_prior_actor_forward(x, prepared, *, max_action, block_b=None,
                              out_dtype=jnp.float32):
    """x: [B, obs + 2*goal] float32.  Returns actions [B, action_dim]."""
    B, in_full = x.shape
    assert in_full == prepared["in_full"], "input width mismatch"
    wd = prepared["compute_dtype"]
    hidden = prepared["hidden"]
    act_dim = prepared["act_dim"]
    act_pad = prepared["act_pad"]
    hp = hidden + act_pad

    if block_b is None:
        block_b = _pick_block_b(B)
    block_b = max(16, _round_up(block_b, 16))

    grid_b = pl.cdiv(B, block_b)
    padded_B = grid_b * block_b

    # Only the batch input is touched per call; zero-pad the tail block so no
    # grid step ever reads uninitialized VMEM rows.
    x_c = x.astype(wd)
    if padded_B != B:
        x_c = jnp.pad(x_c, ((0, padded_B - B), (0, 0)))

    # Weights/biases are small and grid-invariant: replicate to every step.
    def rep(shape):
        return pl.BlockSpec(shape, lambda i: (0,) * len(shape))

    kernel = functools.partial(_actor_kernel,
                               max_action=float(max_action), hidden=hidden)

    out = pl.pallas_call(
        kernel,
        out_shape=jax.ShapeDtypeStruct((padded_B, act_pad), out_dtype),
        grid_spec=pltpu.PrefetchScalarGridSpec(
            num_scalar_prefetch=0,
            grid=(grid_b,),
            in_specs=[
                pl.BlockSpec((block_b, in_full), lambda i: (i, 0)),   # x
                rep((in_full, hp)), rep((1, hidden)),                 # fused fc1+skip, b1
                rep((hidden, hidden)), rep((1, hidden)),              # fc2
                rep((hidden, hidden)), rep((1, hidden)),              # fc3
                rep((hidden, act_pad)),                               # action_out (padded)
                rep((1, act_pad)),                                    # bo + bs (padded)
            ],
            out_specs=pl.BlockSpec((block_b, act_pad), lambda i: (i, 0)),
        ),
        compiler_params=pltpu.CompilerParams(
            dimension_semantics=("parallel",)),
    )(x_c, prepared["wf"], prepared["b1"], prepared["w2"], prepared["b2"],
      prepared["w3"], prepared["b3"], prepared["wo"], prepared["b_out"])

    return out[:B, :act_dim]


# ----------------------------------------------------------------------------
# Synthetic init + plain-JAX reference
# ----------------------------------------------------------------------------
def init_params(key, obs, goal, action, hidden=256):
    """Deterministic synthetic init. Weights are [in, out], biases [1, out]."""
    in_dim = obs + goal  # trim_ag == True
    shapes = [
        (in_dim, hidden), (1, hidden),    # fc1
        (hidden, hidden), (1, hidden),    # fc2
        (hidden, hidden), (1, hidden),    # fc3
        (hidden, action), (1, action),    # action_out
        (in_dim, action), (1, action),    # skip_layer
    ]
    keys = jax.random.split(key, len(shapes))
    params = []
    for k, s in zip(keys, shapes):
        fan_in = s[0] if s[0] > 1 else s[1]
        scale = 1.0 / jnp.sqrt(jnp.float32(fan_in))
        params.append(jax.random.uniform(k, s, jnp.float32, -scale, scale))
    return tuple(params)


def reference_forward(x, params, *, goal_dim, max_action):
    """Plain-JAX reference mirroring the PyTorch forward."""
    x = x[..., :-goal_dim]
    w1, b1, w2, b2, w3, b3, wo, bo, ws, bs = params
    skip = x @ ws + bs
    h = jax.nn.relu(x @ w1 + b1)
    h = jax.nn.relu(h @ w2 + b2)
    h = jax.nn.relu(h @ w3 + b3)
    return max_action * jnp.tanh(h @ wo + bo + skip)


# TODO(synk): normed_forward / set_normalizers depend on external normalizer
# objects (running mean/std state) and are not part of the kernel forward.

if __name__ == "__main__":
    # env_params: obs=10, goal=5, action=4, action_max=1.0 (hidden=256 fixed by module)
    OBS, GOAL, ACTION = 10, 5, 4
    MAX_ACTION = 1.0
    BATCH = 32   # small demo batch

    key = jax.random.PRNGKey(0)
    kx, kp = jax.random.split(key)

    # Input to forward() is [obs || goal || achieved_goal] -> obs + 2*goal features.
    x = jax.random.normal(kx, (BATCH, OBS + 2 * GOAL), jnp.float32)
    params = init_params(kp, OBS, GOAL, ACTION)

    ref = reference_forward(x, params, goal_dim=GOAL, max_action=MAX_ACTION)

    # Exact-math check: f32 compute path.
    prep_f32 = prepare_params(params, goal_dim=GOAL, compute_dtype=jnp.float32)
    out_f32 = jax.block_until_ready(
        value_prior_actor_forward(x, prep_f32, max_action=MAX_ACTION))
    assert out_f32.shape == (BATCH, ACTION)
    assert jnp.allclose(out_f32, ref, atol=1e-5, rtol=1e-5), "f32 mismatch vs reference"

    # Fast path: bf16 MXU operands, f32 accumulation / elementwise.
    prep_bf16 = prepare_params(params, goal_dim=GOAL)   # prepared ONCE, reused per call
    out_bf16 = jax.block_until_ready(
        value_prior_actor_forward(x, prep_bf16, max_action=MAX_ACTION))
    assert out_bf16.shape == (BATCH, ACTION)
    assert jnp.allclose(out_bf16, ref, atol=5e-2, rtol=5e-2), "bf16 mismatch vs reference"

    print("KERNEL_OK")
</pallas_src>

<mosaic_0001>
module attributes {stable_mosaic.version = 11 : i64} {
  func.func @_actor_kernel(%arg0: i32, %arg1: memref<32x20xf32, #tpu.memory_space<vmem>>, %arg2: memref<20x384xf32, #tpu.memory_space<vmem>>, %arg3: memref<1x256xf32, #tpu.memory_space<vmem>>, %arg4: memref<256x256xf32, #tpu.memory_space<vmem>>, %arg5: memref<1x256xf32, #tpu.memory_space<vmem>>, %arg6: memref<256x256xf32, #tpu.memory_space<vmem>>, %arg7: memref<1x256xf32, #tpu.memory_space<vmem>>, %arg8: memref<256x128xf32, #tpu.memory_space<vmem>>, %arg9: memref<1x128xf32, #tpu.memory_space<vmem>>, %arg10: memref<32x128xf32, #tpu.memory_space<vmem>>) attributes {dimension_semantics = [#tpu.dimension_semantics<parallel>], iteration_bounds = array<i64: 1>, scalar_prefetch = 0 : i64, scratch_operands = 0 : i64, tpu.core_type = #tpu.core_type<tc>, window_params = [{transform_indices = @transform_0, window_bounds = array<i64: 32, 20>}, {pipeline_mode = #tpu.pipeline_mode<synchronous>, transform_indices = @transform_1, window_bounds = array<i64: 20, 384>}, {pipeline_mode = #tpu.pipeline_mode<synchronous>, transform_indices = @transform_2, window_bounds = array<i64: 1, 256>}, {pipeline_mode = #tpu.pipeline_mode<synchronous>, transform_indices = @transform_3, window_bounds = array<i64: 256, 256>}, {pipeline_mode = #tpu.pipeline_mode<synchronous>, transform_indices = @transform_4, window_bounds = array<i64: 1, 256>}, {pipeline_mode = #tpu.pipeline_mode<synchronous>, transform_indices = @transform_5, window_bounds = array<i64: 256, 256>}, {pipeline_mode = #tpu.pipeline_mode<synchronous>, transform_indices = @transform_6, window_bounds = array<i64: 1, 256>}, {pipeline_mode = #tpu.pipeline_mode<synchronous>, transform_indices = @transform_7, window_bounds = array<i64: 256, 128>}, {pipeline_mode = #tpu.pipeline_mode<synchronous>, transform_indices = @transform_8, window_bounds = array<i64: 1, 128>}, {transform_indices = @transform_9, window_bounds = array<i64: 32, 128>}]} {
    %c0 = arith.constant 0 : index
    %c0_0 = arith.constant 0 : index
    %0 = vector.load %arg1[%c0, %c0_0] : memref<32x20xf32, #tpu.memory_space<vmem>>, vector<32x20xf32>
    %c0_1 = arith.constant 0 : index
    %c0_2 = arith.constant 0 : index
    %1 = vector.load %arg2[%c0_1, %c0_2] : memref<20x384xf32, #tpu.memory_space<vmem>>, vector<20x384xf32>
    %cst = arith.constant dense<0.000000e+00> : vector<32x384xf32>
    %2 = tpu.matmul %0, %1, %cst {dimension_numbers = #tpu.dot_dimension_numbers<[1], [0], [0], [1], [0, 0, 1, 1], [], []>} : vector<32x20xf32>, vector<20x384xf32>, vector<32x384xf32> -> vector<32x384xf32>
    %3 = vector.extract_strided_slice %2 {offsets = [0, 256], sizes = [32, 128], strides = [1, 1]} : vector<32x384xf32> to vector<32x128xf32>
    %4 = vector.extract_strided_slice %2 {offsets = [0, 0], sizes = [32, 256], strides = [1, 1]} : vector<32x384xf32> to vector<32x256xf32>
    %c0_3 = arith.constant 0 : index
    %c0_4 = arith.constant 0 : index
    %5 = vector.load %arg3[%c0_3, %c0_4] : memref<1x256xf32, #tpu.memory_space<vmem>>, vector<1x256xf32>
    %6 = vector.broadcast %5 : vector<1x256xf32> to vector<32x256xf32>
    %7 = arith.addf %4, %6 : vector<32x256xf32>
    %cst_5 = arith.constant 0.000000e+00 : f32
    %8 = vector.broadcast %cst_5 : f32 to vector<32x256xf32>
    %9 = arith.maximumf %7, %8 : vector<32x256xf32>
    %c0_6 = arith.constant 0 : index
    %c0_7 = arith.constant 0 : index
    %10 = vector.load %arg4[%c0_6, %c0_7] : memref<256x256xf32, #tpu.memory_space<vmem>>, vector<256x256xf32>
    %cst_8 = arith.constant dense<0.000000e+00> : vector<32x256xf32>
    %11 = tpu.matmul %9, %10, %cst_8 {dimension_numbers = #tpu.dot_dimension_numbers<[1], [0], [0], [1], [0, 0, 1, 1], [], []>} : vector<32x256xf32>, vector<256x256xf32>, vector<32x256xf32> -> vector<32x256xf32>
    %c0_9 = arith.constant 0 : index
    %c0_10 = arith.constant 0 : index
    %12 = vector.load %arg5[%c0_9, %c0_10] : memref<1x256xf32, #tpu.memory_space<vmem>>, vector<1x256xf32>
    %13 = vector.broadcast %12 : vector<1x256xf32> to vector<32x256xf32>
    %14 = arith.addf %11, %13 : vector<32x256xf32>
    %cst_11 = arith.constant 0.000000e+00 : f32
    %15 = vector.broadcast %cst_11 : f32 to vector<32x256xf32>
    %16 = arith.maximumf %14, %15 : vector<32x256xf32>
    %c0_12 = arith.constant 0 : index
    %c0_13 = arith.constant 0 : index
    %17 = vector.load %arg6[%c0_12, %c0_13] : memref<256x256xf32, #tpu.memory_space<vmem>>, vector<256x256xf32>
    %cst_14 = arith.constant dense<0.000000e+00> : vector<32x256xf32>
    %18 = tpu.matmul %16, %17, %cst_14 {dimension_numbers = #tpu.dot_dimension_numbers<[1], [0], [0], [1], [0, 0, 1, 1], [], []>} : vector<32x256xf32>, vector<256x256xf32>, vector<32x256xf32> -> vector<32x256xf32>
    %c0_15 = arith.constant 0 : index
    %c0_16 = arith.constant 0 : index
    %19 = vector.load %arg7[%c0_15, %c0_16] : memref<1x256xf32, #tpu.memory_space<vmem>>, vector<1x256xf32>
    %20 = vector.broadcast %19 : vector<1x256xf32> to vector<32x256xf32>
    %21 = arith.addf %18, %20 : vector<32x256xf32>
    %cst_17 = arith.constant 0.000000e+00 : f32
    %22 = vector.broadcast %cst_17 : f32 to vector<32x256xf32>
    %23 = arith.maximumf %21, %22 : vector<32x256xf32>
    %c0_18 = arith.constant 0 : index
    %c0_19 = arith.constant 0 : index
    %24 = vector.load %arg8[%c0_18, %c0_19] : memref<256x128xf32, #tpu.memory_space<vmem>>, vector<256x128xf32>
    %cst_20 = arith.constant dense<0.000000e+00> : vector<32x128xf32>
    %25 = tpu.matmul %23, %24, %cst_20 {dimension_numbers = #tpu.dot_dimension_numbers<[1], [0], [0], [1], [0, 0, 1, 1], [], []>} : vector<32x256xf32>, vector<256x128xf32>, vector<32x128xf32> -> vector<32x128xf32>
    %26 = arith.addf %25, %3 : vector<32x128xf32>
    %c0_21 = arith.constant 0 : index
    %c0_22 = arith.constant 0 : index
    %27 = vector.load %arg9[%c0_21, %c0_22] : memref<1x128xf32, #tpu.memory_space<vmem>>, vector<1x128xf32>
    %28 = vector.broadcast %27 : vector<1x128xf32> to vector<32x128xf32>
    %29 = arith.addf %26, %28 : vector<32x128xf32>
    %30 = math.tanh %29 : vector<32x128xf32>
    %cst_23 = arith.constant 1.000000e+00 : f32
    %31 = vector.broadcast %cst_23 : f32 to vector<32x128xf32>
    %32 = arith.mulf %31, %30 : vector<32x128xf32>
    %c0_24 = arith.constant 0 : index
    %c0_25 = arith.constant 0 : index
    %33 = vector.load %arg10[%c0_24, %c0_25] : memref<32x128xf32, #tpu.memory_space<vmem>>, vector<32x128xf32>
    tpu.vector_store %arg10[%c0_24, %c0_25], %32 {strides = array<i32>} : memref<32x128xf32, #tpu.memory_space<vmem>>, vector<32x128xf32>,
    return
  }
  func.func @transform_0(%arg0: i32) -> (i32, i32) {
    %c0_i32 = arith.constant 0 : i32
    %c0_i32_0 = arith.constant 0 : i32
    return %arg0, %c0_i32 : i32, i32
  }
  func.func @transform_1(%arg0: i32) -> (i32, i32) {
    %c0_i32 = arith.constant 0 : i32
    %c0_i32_0 = arith.constant 0 : i32
    %c0_i32_1 = arith.constant 0 : i32
    return %c0_i32, %c0_i32_0 : i32, i32
  }
  func.func @transform_2(%arg0: i32) -> (i32, i32) {
    %c0_i32 = arith.constant 0 : i32
    %c0_i32_0 = arith.constant 0 : i32
    %c0_i32_1 = arith.constant 0 : i32
    return %c0_i32, %c0_i32_0 : i32, i32
  }
  func.func @transform_3(%arg0: i32) -> (i32, i32) {
    %c0_i32 = arith.constant 0 : i32
    %c0_i32_0 = arith.constant 0 : i32
    %c0_i32_1 = arith.constant 0 : i32
    return %c0_i32, %c0_i32_0 : i32, i32
  }
  func.func @transform_4(%arg0: i32) -> (i32, i32) {
    %c0_i32 = arith.constant 0 : i32
    %c0_i32_0 = arith.constant 0 : i32
    %c0_i32_1 = arith.constant 0 : i32
    return %c0_i32, %c0_i32_0 : i32, i32
  }
  func.func @transform_5(%arg0: i32) -> (i32, i32) {
    %c0_i32 = arith.constant 0 : i32
    %c0_i32_0 = arith.constant 0 : i32
    %c0_i32_1 = arith.constant 0 : i32
    return %c0_i32, %c0_i32_0 : i32, i32
  }
  func.func @transform_6(%arg0: i32) -> (i32, i32) {
    %c0_i32 = arith.constant 0 : i32
    %c0_i32_0 = arith.constant 0 : i32
    %c0_i32_1 = arith.constant 0 : i32
    return %c0_i32, %c0_i32_0 : i32, i32
  }
  func.func @transform_7(%arg0: i32) -> (i32, i32) {
    %c0_i32 = arith.constant 0 : i32
    %c0_i32_0 = arith.constant 0 : i32
    %c0_i32_1 = arith.constant 0 : i32
    return %c0_i32, %c0_i32_0 : i32, i32
  }
  func.func @transform_8(%arg0: i32) -> (i32, i32) {
    %c0_i32 = arith.constant 0 : i32
    %c0_i32_0 = arith.constant 0 : i32
    %c0_i32_1 = arith.constant 0 : i32
    return %c0_i32, %c0_i32_0 : i32, i32
  }
  func.func @transform_9(%arg0: i32) -> (i32, i32) {
    %c0_i32 = arith.constant 0 : i32
    %c0_i32_0 = arith.constant 0 : i32
    return %arg0, %c0_i32 : i32, i32
  }
}

</mosaic_0001>

<bundles_post_ra>
// kernel: tpu_custom_call.1
= control target key start
LH: loop header
LB: loop body
LE: loop exit
PB: predicated region body
PF: predicated region fallthrough
CT: control target
= control target key end

     0   :  { %14 = vsyncpa [#allocation3], 0  ;;  %s1105_s0 = inlined_call_operand.vmem [shape: f32[32,20], index: 0, kind: input, shape index: {}]   ;;  %s1106_s1 = inlined_call_operand.hbm [shape: f32[20,384], index: 1, kind: input, shape index: {}]   ;;  %s1107_s2 = inlined_call_operand.vmem [shape: f32[1,256], index: 2, kind: input, shape index: {}]   ;;  %s1108_s3 = inlined_call_operand.hbm [shape: f32[256,256], index: 3, kind: input, shape index: {}]   ;;  %s1109_s4 = inlined_call_operand.vmem [shape: f32[1,256], index: 4, kind: input, shape index: {}]   ;;  %s1110_s5 = inlined_call_operand.hbm [shape: f32[256,256], index: 5, kind: input, shape index: {}]   ;;  %s1111_s6 = inlined_call_operand.vmem [shape: f32[1,256], index: 6, kind: input, shape index: {}]   ;;  %s1112_s7 = inlined_call_operand.hbm [shape: f32[256,128], index: 7, kind: input, shape index: {}]   ;;  %s1113_s8 = inlined_call_operand.vmem [shape: f32[1,128], index: 8, kind: input, shape index: {}]   ;;  %s1114_s9 = inlined_call_operand.hbm [shape: f32[32,128], index: 9, kind: output, shape index: {}]  }
   0x1   :  { %15 = vsyncpa [#allocation6], 0 }
   0x2   :  { %16 = vsyncpa [#allocation9], 0  ;;  %s39_s11 = sshll.u32 %s1108_s3, 4  ;;  %s40_s11 = int_to_ptr.hbm [resolvable:$true] %s39_s11 }
   0x3   :  { %17 = vsyncpa [#allocation4], 0  ;;  %s951_s12 = smov [#allocation5]   ;;  %s24_s16 = sshll.u32 %s1106_s1, 4  ;;  %s25_s16 = int_to_ptr.hbm [resolvable:$true] %s24_s16 }
   0x4   :  { %s41_s13 = sshll.u32 %s951_s12, 4  ;;  %s952_s17 = smov 256   ;;  %s42_s13 = int_to_ptr.vmem [resolvable:$true] %s41_s13 }
   0x5   :  { %s953_s18 = smov 16   ;;  %s954_s19 = smov [#allocation2]  }
   0x6   :  { %47 = dma.hbm_to_vmem [thread:$0]  %s40_s11, 8192, %s42_s13, [#allocation6], %s952_s17, %s952_s17, %s953_s18  }
   0x7   :  { %s26_s20 = sshll.u32 %s954_s19, 4  ;;  %s955_s21 = smov 384   ;;  %s27_s20 = int_to_ptr.vmem [resolvable:$true] %s26_s20 }
   0x8   :  { %s956_s22 = smov 24   ;;  %s54_s24 = sshll.u32 %s1110_s5, 4  ;;  %s55_s24 = int_to_ptr.hbm [resolvable:$true] %s54_s24 }
   0x9   :  { %32 = dma.hbm_to_vmem [thread:$0]  %s25_s16, 1152, %s27_s20, [#allocation3], %s955_s21, %s955_s21, %s956_s22  }
   0xa   :  { %s957_s25 = smov [#allocation7]   ;;  %s69_s28 = sshll.u32 %s1112_s7, 4  ;;  %s70_s28 = int_to_ptr.hbm [resolvable:$true] %s69_s28 }
   0xb   :  { %s56_s26 = sshll.u32 %s957_s25, 4  ;;  %s958_s29 = smov [#allocation8]   ;;  %s57_s26 = int_to_ptr.vmem [resolvable:$true] %s56_s26 }
   0xc   :  { %62 = dma.hbm_to_vmem [thread:$0]  %s55_s24, 8192, %s57_s26, [#allocation6], %s952_s17, %s952_s17, %s953_s18  }
   0xd   :  { %s71_s30 = sshll.u32 %s958_s29, 4  ;;  %s959_s10 = smov 128   ;;  %s72_s30 = int_to_ptr.vmem [resolvable:$true] %s71_s30 }
   0xe   :  { %s960_s11 = smov 8  }
   0xf   :  { %77 = dma.hbm_to_vmem [thread:$0]  %s70_s28, 4096, %s72_s30, [#allocation9], %s959_s10, %s959_s10, %s960_s11  }
  0x10   :  { %943 = dma.done.wait [#allocation3], 1152  }
  0x11   :  { %944 = vsyncadd [#allocation3], 4294966144 }
  0x12   :  { %945 = dma.done.wait [#allocation6], 16384  }
  0x13   :  { %946 = vsyncadd [#allocation6], 4294950912 }
  0x14   :  { %947 = dma.done.wait [#allocation9], 4096  }
  0x15   :  { %948 = vsyncadd [#allocation9], 4294963200  ;;  %vm122_vm0 = vcmask 1043456   ;;  %v106_v0 = vld [vmem:[#allocation2 + $0x30] sm:$0xf]  ;;  %v103_v2 = vld [vmem:[#allocation2 + $0x18] sm:$0xff] }
  0x16   :  { %v107_v1 = vld [vmem:[#allocation2 + $0x38] sm:$0xf]  ;;  %756 = vmatpush.msk.msra.mxu0 %vm122_vm0, %v106_v0  ;;  %v104_v3 = vld [vmem:[#allocation2 + $0x20] sm:$0xff]  ;;  %v101_v5 = vld [vmem:[#allocation2 + $0x8] sm:$0xff]  ;;  %vm109_vm1 = vcmask 162816   ;;  %s741_s24 = sshll.u32 %s1114_s9, 4  ;;  %s742_s24 = int_to_ptr.hbm [resolvable:$true] %s741_s24 }
  0x17   :  { %761 = vmatpush.msk.msra.mxu1 %vm122_vm0, %v107_v1  ;;  %v100_v4 = vld [vmem:[#allocation2] sm:$0xff]  ;;  %v105_v8 = vld [vmem:[#allocation2 + $0x28] sm:$0xff]  ;;  %v271_v9 = vld [vmem:[#allocation5 + $0xf0] sm:$0xff] }
  0x18   :  { %146 = vmatpush.msra.mxu0 %v103_v2  ;;  %v96_v6 = vld [vmem:[%s1105_s0] sm:$0xff]  ;;  %v102_v11 = vld [vmem:[#allocation2 + $0x10] sm:$0xff]  ;;  %v269_v12 = vld [vmem:[#allocation5 + $0xe0] sm:$0xff]  ;;  %311 = vmatpush.msra.mxu3 %v271_v9 }
  0x19   :  { %175 = vmatpush.msra.mxu1 %v104_v3  ;;  %v108_v7 = vld [vmem:[#allocation2 + $0x40] sm:$0xf]  ;;  %v270_v13 = vld [vmem:[#allocation5 + $0xe8] sm:$0xff]  ;;  %v267_v15 = vld [vmem:[#allocation5 + $0xd0] sm:$0xff] }
  0x1a   :  { %766 = vmatpush.msk.msra.mxu2 %vm122_vm0, %v108_v7  ;;  %147 = vmatpush.msra.mxu0 %v100_v4  ;;  %v272_v10 = vld [vmem:[#allocation5 + $0xf8] sm:$0xff]  ;;  %v303_v17 = vld [vmem:[#allocation5 + $0x1f0] sm:$0xff]  ;;  %v302_v18 = vld [vmem:[#allocation5 + $0x1e8] sm:$0xff] }
  0x1b   :  { %176 = vmatpush.msra.mxu1 %v101_v5  ;;  %757 = vmatmul.msk.f32.vlgmr.msra.gmra.mxu0 %vm109_vm1, %v96_v6  ;;  %v304_v14 = vld [vmem:[#allocation5 + $0x1f8] sm:$0xff]  ;;  %v265_v19 = vld [vmem:[#allocation5 + $0xc0] sm:$0xff]  ;;  %v266_v22 = vld [vmem:[#allocation5 + $0xc8] sm:$0xff] }
  0x1c   :  { %762 = vmatmul.msk.f32.vlgmr.msra.gmra.mxu1 %vm109_vm1, %v96_v6  ;;  %204 = vmatpush.msra.mxu2 %v105_v8  ;;  %v268_v16 = vld [vmem:[#allocation5 + $0xd8] sm:$0xff]  ;;  %v97_v20 = vld [vmem:[%s1105_s0 + $0x8] sm:$0xff]  ;;  %v263_v23 = vld [vmem:[#allocation5 + $0xb0] sm:$0xff] }
  0x1d   :  { %369 = vmatpush.msrb.mxu1 %v272_v10  ;;  %312 = vmatpush.msra.mxu3 %v269_v12  ;;  %v300_v21 = vld [vmem:[#allocation5 + $0x1d8] sm:$0xff]  ;;  %v301_v24 = vld [vmem:[#allocation5 + $0x1e0] sm:$0xff]  ;;  %v298_v25 = vld [vmem:[#allocation5 + $0x1c8] sm:$0xff] }
  0x1e   :  { %205 = vmatpush.msra.mxu2 %v102_v11  ;;  %340 = vmatpush.msrb.mxu0 %v303_v17  ;;  %v264_v26 = vld [vmem:[#allocation5 + $0xb8] sm:$0xff]  ;;  %v261_v27 = vld [vmem:[#allocation5 + $0xa0] sm:$0xff]  ;;  %v262_v29 = vld [vmem:[#allocation5 + $0xa8] sm:$0xff] }
  0x1f   :  { %767 = vmatmul.msk.f32.vlgmr.msra.gmra.mxu2 %vm109_vm1, %v96_v6  ;;  %370 = vmatpush.msrb.mxu1 %v270_v13  ;;  %v296_v28 = vld [vmem:[#allocation5 + $0x1b8] sm:$0xff]  ;;  %v299_v30 = vld [vmem:[#allocation5 + $0x1d0] sm:$0xff]  ;;  %v294_v32 = vld [vmem:[#allocation5 + $0x1a8] sm:$0xff] }
  0x20   :  { %398 = vmatpush.msrb.mxu2 %v304_v14  ;;  %313 = vmatpush.msra.mxu3 %v267_v15  ;;  %v259_v31 = vld [vmem:[#allocation5 + $0x90] sm:$0xff]  ;;  %v260_v33 = vld [vmem:[#allocation5 + $0x98] sm:$0xff]  ;;  %v98_v34 = vld [vmem:[%s1105_s0 + $0x10] sm:$0xff] }
  0x21   :  { %371 = vmatpush.msrb.mxu1 %v268_v16  ;;  %341 = vmatpush.msrb.mxu0 %v301_v24  ;;  %v292_v35 = vld [vmem:[#allocation5 + $0x198] sm:$0xff]  ;;  %v297_v36 = vld [vmem:[#allocation5 + $0x1c0] sm:$0xff]  ;;  %v258_v38 = vld [vmem:[#allocation5 + $0x88] sm:$0xff] }
  0x22   :  { %399 = vmatpush.msrb.mxu2 %v302_v18  ;;  %314 = vmatpush.msra.mxu3 %v265_v19  ;;  %v257_v37 = vld [vmem:[#allocation5 + $0x80] sm:$0xff]  ;;  %v290_v39 = vld [vmem:[#allocation5 + $0x188] sm:$0xff]  ;;  %v295_v40 = vld [vmem:[#allocation5 + $0x1b0] sm:$0xff] }
  0x23   :  { %758 = vmatmul.msk.f32.gmra.mxu0 %vm109_vm1, %v97_v20  ;;  %372 = vmatpush.msrb.mxu1 %v266_v22  ;;  %v255_v41 = vld [vmem:[#allocation5 + $0x70] sm:$0xff]  ;;  %v256_v42 = vld [vmem:[#allocation5 + $0x78] sm:$0xff]  ;;  %v293_v44 = vld [vmem:[#allocation5 + $0x1a0] sm:$0xff] }
  0x24   :  { %763 = vmatmul.msk.f32.gmra.mxu1 %vm109_vm1, %v97_v20  ;;  %400 = vmatpush.msrb.mxu2 %v300_v21  ;;  %v288_v43 = vld [vmem:[#allocation5 + $0x178] sm:$0xff]  ;;  %v253_v45 = vld [vmem:[#allocation5 + $0x60] sm:$0xff]  ;;  %v254_v46 = vld [vmem:[#allocation5 + $0x68] sm:$0xff] }
  0x25   :  { %315 = vmatpush.msra.mxu3 %v263_v23  ;;  %373 = vmatpush.msrb.mxu1 %v264_v26  ;;  %v286_v47 = vld [vmem:[#allocation5 + $0x168] sm:$0xff]  ;;  %v99_v48 = vld [vmem:[%s1105_s0 + $0x18] sm:$0xff]  ;;  %v252_v51 = vld [vmem:[#allocation5 + $0x58] sm:$0xff] }
  0x26   :  { %401 = vmatpush.msrb.mxu2 %v298_v25  ;;  %342 = vmatpush.msrb.mxu0 %v299_v30  ;;  %v291_v49 = vld [vmem:[#allocation5 + $0x190] sm:$0xff]  ;;  %v284_v52 = vld [vmem:[#allocation5 + $0x158] sm:$0xff]  ;;  %v289_v53 = vld [vmem:[#allocation5 + $0x180] sm:$0xff] }
  0x27   :  { %768 = vmatmul.msk.f32.gmra.mxu2 %vm109_vm1, %v97_v20  ;;  %316 = vmatpush.msra.mxu3 %v261_v27  ;;  %v251_v50 = vld [vmem:[#allocation5 + $0x50] sm:$0xff]  ;;  %v249_v54 = vld [vmem:[#allocation5 + $0x40] sm:$0xff]  ;;  %v250_v55 = vld [vmem:[#allocation5 + $0x48] sm:$0xff] }
  0x28   :  { %402 = vmatpush.msrb.mxu2 %v296_v28  ;;  %374 = vmatpush.msrb.mxu1 %v262_v29  ;;  %v282_v56 = vld [vmem:[#allocation5 + $0x148] sm:$0xff]  ;;  %v287_v57 = vld [vmem:[#allocation5 + $0x170] sm:$0xff]  ;;  %v248_v59 = vld [vmem:[#allocation5 + $0x38] sm:$0xff] }
  0x29   :  { %317 = vmatpush.msra.mxu3 %v259_v31  ;;  %343 = vmatpush.msrb.mxu0 %v297_v36  ;;  %v247_v58 = vld [vmem:[#allocation5 + $0x30] sm:$0xff]  ;;  %v280_v60 = vld [vmem:[#allocation5 + $0x138] sm:$0xff]  ;;  %v285_v61 = vld [vmem:[#allocation5 + $0x160] sm:$0xff] }
  0x2a   :  { %403 = vmatpush.msrb.mxu2 %v294_v32  ;;  %375 = vmatpush.msrb.mxu1 %v260_v33  ;;  %v245_v62 = vld [vmem:[#allocation5 + $0x20] sm:$0xff]  ;;  %v246_v63 = vld [vmem:[#allocation5 + $0x28] sm:$0xff]  ;;  %v283_v1 = vld [vmem:[#allocation5 + $0x150] sm:$0xff] }
  0x2b   :  { %759 = vmatmul.msk.f32.gmra.mxu0 %vm109_vm1, %v98_v34  ;;  %318 = vmatpush.msra.mxu3 %v257_v37  ;;  %v278_v0 = vld [vmem:[#allocation5 + $0x128] sm:$0xff]  ;;  %v243_v2 = vld [vmem:[#allocation5 + $0x10] sm:$0xff]  ;;  %v244_v3 = vld [vmem:[#allocation5 + $0x18] sm:$0xff] }
  0x2c   :  { %764 = vmatmul.msk.f32.gmra.mxu1 %vm109_vm1, %v98_v34  ;;  %404 = vmatpush.msrb.mxu2 %v292_v35  ;;  %v276_v4 = vld [vmem:[#allocation5 + $0x118] sm:$0xff]  ;;  %v281_v5 = vld [vmem:[#allocation5 + $0x140] sm:$0xff]  ;;  %v242_v7 = vld [vmem:[#allocation5 + $0x8] sm:$0xff] }
  0x2d   :  { %376 = vmatpush.msrb.mxu1 %v258_v38  ;;  %344 = vmatpush.msrb.mxu0 %v295_v40  ;;  %v241_v6 = vld [vmem:[#allocation5] sm:$0xff]  ;;  %v274_v8 = vld [vmem:[#allocation5 + $0x108] sm:$0xff]  ;;  %v279_v9 = vld [vmem:[#allocation5 + $0x130] sm:$0xff] }
  0x2e   :  { %405 = vmatpush.msrb.mxu2 %v290_v39  ;;  %319 = vmatpush.msra.mxu3 %v255_v41  ;;  %v277_v10 = vld [vmem:[#allocation5 + $0x120] sm:$0xff]  ;;  %v275_v11 = vld [vmem:[#allocation5 + $0x110] sm:$0xff]  ;;  %v219_v13 = vld [vmem:[%s1107_s2] sm:$0x3] }
  0x2f   :  { %769 = vmatmul.msk.f32.gmra.mxu2 %vm109_vm1, %v98_v34  ;;  %377 = vmatpush.msrb.mxu1 %v256_v42  ;;  %v273_v12 = vld [vmem:[#allocation5 + $0x100] sm:$0xff]  ;;  %v1054_v14 = vperm.slane %v219_v13, 0  ;;  %v1056_v15 = vperm.slane %v219_v13, 1  ;;  %v497_v16 = vld [vmem:[#allocation7 + $0x1f0] sm:$0xff]  ;;  %v498_v17 = vld [vmem:[#allocation7 + $0x1f8] sm:$0xff] }
  0x30   :  { %406 = vmatpush.msrb.mxu2 %v288_v43  ;;  %345 = vmatpush.msrb.mxu0 %v293_v44  ;;  %v465_v18 = vld [vmem:[#allocation7 + $0xf0] sm:$0xff]  ;;  %v495_v19 = vld [vmem:[#allocation7 + $0x1e0] sm:$0xff]  ;;  %v466_v20 = vld [vmem:[#allocation7 + $0xf8] sm:$0xff] }
  0x31   :  { %320 = vmatpush.msra.mxu3 %v253_v45  ;;  %378 = vmatpush.msrb.mxu1 %v254_v46  ;;  %v496_v21 = vld [vmem:[#allocation7 + $0x1e8] sm:$0xff]  ;;  %v463_v24 = vld [vmem:[#allocation7 + $0xe0] sm:$0xff]  ;;  %v493_v25 = vld [vmem:[#allocation7 + $0x1d0] sm:$0xff] }
  0x32   :  { %407 = vmatpush.msrb.mxu2 %v286_v47  ;;  %346 = vmatpush.msrb.mxu0 %v291_v49  ;;  %v464_v26 = vld [vmem:[#allocation7 + $0xe8] sm:$0xff]  ;;  %v494_v29 = vld [vmem:[#allocation7 + $0x1d8] sm:$0xff]  ;;  %v461_v30 = vld [vmem:[#allocation7 + $0xd0] sm:$0xff] }
  0x33   :  { %760 = vmatmul.msk.f32.gmra.mxu0 %vm109_vm1, %v99_v48  ;;  %321 = vmatpush.msra.mxu3 %v251_v50  ;;  %v462_v31 = vld [vmem:[#allocation7 + $0xd8] sm:$0xff]  ;;  %v491_v34 = vld [vmem:[#allocation7 + $0x1c0] sm:$0xff]  ;;  %v492_v35 = vld [vmem:[#allocation7 + $0x1c8] sm:$0xff] }
  0x34   :  { %765 = vmatmul.msk.f32.gmra.mxu1 %vm109_vm1, %v99_v48  ;;  %408 = vmatpush.msrb.mxu2 %v284_v52  ;;  %v459_v36 = vld [vmem:[#allocation7 + $0xc0] sm:$0xff]  ;;  %v460_v37 = vld [vmem:[#allocation7 + $0xc8] sm:$0xff]  ;;  %v489_v38 = vld [vmem:[#allocation7 + $0x1b0] sm:$0xff] }
  0x35   :  { %379 = vmatpush.msrb.mxu1 %v252_v51  ;;  %347 = vmatpush.msrb.mxu0 %v289_v53  ;;  %v490_v39 = vld [vmem:[#allocation7 + $0x1b8] sm:$0xff]  ;;  %v457_v40 = vld [vmem:[#allocation7 + $0xb0] sm:$0xff]  ;;  %v487_v44 = vld [vmem:[#allocation7 + $0x1a0] sm:$0xff] }
  0x36   :  { %322 = vmatpush.msra.mxu3 %v249_v54  ;;  %409 = vmatpush.msrb.mxu2 %v282_v56  ;;  %v458_v41 = vld [vmem:[#allocation7 + $0xb8] sm:$0xff]  ;;  %v488_v45 = vld [vmem:[#allocation7 + $0x1a8] sm:$0xff]  ;;  %v485_v52 = vld [vmem:[#allocation7 + $0x190] sm:$0xff] }
  0x37   :  { %380 = vmatpush.msrb.mxu1 %v250_v55  ;;  %770 = vmatmul.msk.f32.gmra.mxu2 %vm109_vm1, %v99_v48  ;;  %v455_v48 = vld [vmem:[#allocation7 + $0xa0] sm:$0xff]  ;;  %v456_v49 = vld [vmem:[#allocation7 + $0xa8] sm:$0xff]  ;;  %v486_v53 = vld [vmem:[#allocation7 + $0x198] sm:$0xff] }
  0x38   :  { %348 = vmatpush.msrb.mxu0 %v287_v57  ;;  %323 = vmatpush.msra.mxu3 %v247_v58  ;;  %v453_v54 = vld [vmem:[#allocation7 + $0x90] sm:$0xff]  ;;  %v454_v55 = vld [vmem:[#allocation7 + $0x98] sm:$0xff]  ;;  %v483_v56 = vld [vmem:[#allocation7 + $0x180] sm:$0xff] }
  0x39   :  { %381 = vmatpush.msrb.mxu1 %v248_v59  ;;  %410 = vmatpush.msrb.mxu2 %v280_v60  ;;  %v484_v57 = vld [vmem:[#allocation7 + $0x188] sm:$0xff]  ;;  %v451_v58 = vld [vmem:[#allocation7 + $0x80] sm:$0xff] }
  0x3a   :  { %349 = vmatpush.msrb.mxu0 %v285_v61  ;;  %324 = vmatpush.msra.mxu3 %v245_v62  ;;  %v452_v59 = vld [vmem:[#allocation7 + $0x88] sm:$0xff]  ;;  %v481_v62 = vld [vmem:[#allocation7 + $0x170] sm:$0xff] }
  0x3b   :  { %382 = vmatpush.msrb.mxu1 %v246_v63  ;;  %411 = vmatpush.msrb.mxu2 %v278_v0  ;;  %v482_v63 = vld [vmem:[#allocation7 + $0x178] sm:$0xff] }
  0x3c   :  { %350 = vmatpush.msrb.mxu0 %v283_v1  ;;  %325 = vmatpush.msra.mxu3 %v243_v2  ;;  %v449_v2 = vld [vmem:[#allocation7 + $0x70] sm:$0xff] }
  0x3d   :  { %383 = vmatpush.msrb.mxu1 %v244_v3  ;;  %412 = vmatpush.msrb.mxu2 %v276_v4  ;;  %v450_v3 = vld [vmem:[#allocation7 + $0x78] sm:$0xff] }
  0x3e   :  { %351 = vmatpush.msrb.mxu0 %v281_v5  ;;  %326 = vmatpush.msra.mxu3 %v241_v6  ;;  %v479_v6 = vld [vmem:[#allocation7 + $0x160] sm:$0xff] }
  0x3f   :  { %384 = vmatpush.msrb.mxu1 %v242_v7  ;;  %413 = vmatpush.msrb.mxu2 %v274_v8  ;;  %v480_v7 = vld [vmem:[#allocation7 + $0x168] sm:$0xff]  ;;  %v447_v8 = vld [vmem:[#allocation7 + $0x60] sm:$0xff] }
  0x40   :  { %352 = vmatpush.msrb.mxu0 %v279_v9  ;;  %505 = vmatpush.msrb.mxu3 %v465_v18  ;;  %v477_v18 = vld [vmem:[#allocation7 + $0x150] sm:$0xff] }
  0x41   :  { %592 = vmatpush.msra.mxu2 %v498_v17  ;;  %563 = vmatpush.msra.mxu1 %v466_v20  ;;  %v478_v20 = vld [vmem:[#allocation7 + $0x158] sm:$0xff] }
  0x42   :  { %353 = vmatpush.msrb.mxu0 %v277_v10  ;;  %506 = vmatpush.msrb.mxu3 %v463_v24  ;;  %v473_v24 = vld [vmem:[#allocation7 + $0x130] sm:$0xff] }
  0x43   :  { %593 = vmatpush.msra.mxu2 %v496_v21  ;;  %564 = vmatpush.msra.mxu1 %v464_v26  ;;  %v445_v21 = vld [vmem:[#allocation7 + $0x50] sm:$0xff]  ;;  %v474_v26 = vld [vmem:[#allocation7 + $0x138] sm:$0xff] }
  0x44   :  { %354 = vmatpush.msrb.mxu0 %v275_v11  ;;  %507 = vmatpush.msrb.mxu3 %v461_v30  ;;  %v472_v30 = vld [vmem:[#allocation7 + $0x128] sm:$0xff] }
  0x45   :  { %594 = vmatpush.msra.mxu2 %v494_v29  ;;  %565 = vmatpush.msra.mxu1 %v462_v31  ;;  %v442_v29 = vld [vmem:[#allocation7 + $0x38] sm:$0xff]  ;;  %v439_v31 = vld [vmem:[#allocation7 + $0x20] sm:$0xff] }
  0x46   :  { %355 = vmatpush.msrb.mxu0 %v273_v12  ;;  %508 = vmatpush.msrb.mxu3 %v459_v36  ;;  %v437_v36 = vld [vmem:[#allocation7 + $0x10] sm:$0xff] }
  0x47   :  { %595 = vmatpush.msra.mxu2 %v492_v35  ;;  %566 = vmatpush.msra.mxu1 %v460_v37  ;;  %v470_v35 = vld [vmem:[#allocation7 + $0x118] sm:$0xff]  ;;  %v467_v37 = vld [vmem:[#allocation7 + $0x100] sm:$0xff] }
  0x48   :  { %534 = vmatpush.msra.mxu0 %v497_v16  ;;  %509 = vmatpush.msrb.mxu3 %v457_v40  ;;  %v435_v40 = vld [vmem:[#allocation7] sm:$0xff] }
  0x49   :  { %596 = vmatpush.msra.mxu2 %v490_v39  ;;  %567 = vmatpush.msra.mxu1 %v458_v41  ;;  %v468_v39 = vld [vmem:[#allocation7 + $0x108] sm:$0xff] }
  0x4a   :  { %535 = vmatpush.msra.mxu0 %v495_v19  ;;  %510 = vmatpush.msrb.mxu3 %v455_v48  ;;  %v448_v19 = vld [vmem:[#allocation7 + $0x68] sm:$0xff] }
  0x4b   :  { %597 = vmatpush.msra.mxu2 %v488_v45  ;;  %568 = vmatpush.msra.mxu1 %v456_v49  ;;  %v436_v41 = vld [vmem:[#allocation7 + $0x8] sm:$0xff]  ;;  %v660_v49 = vld [vmem:[#allocation8 + $0xf8] sm:$0xff] }
  0x4c   :  { %536 = vmatpush.msra.mxu0 %v493_v25  ;;  %511 = vmatpush.msrb.mxu3 %v453_v54  ;;  %v444_v25 = vld [vmem:[#allocation7 + $0x48] sm:$0xff]  ;;  %v643_v54 = vld [vmem:[#allocation8 + $0x70] sm:$0xff] }
  0x4d   :  { %598 = vmatpush.msra.mxu2 %v486_v53  ;;  %569 = vmatpush.msra.mxu1 %v454_v55 }
  0x4e   :  { %537 = vmatpush.msra.mxu0 %v491_v34  ;;  %512 = vmatpush.msrb.mxu3 %v451_v58  ;;  %v642_v58 = vld [vmem:[#allocation8 + $0x68] sm:$0xff] }
  0x4f   :  { %599 = vmatpush.msra.mxu2 %v484_v57  ;;  %570 = vmatpush.msra.mxu1 %v452_v59  ;;  %v658_v57 = vld [vmem:[#allocation8 + $0xe8] sm:$0xff] }
  0x50   :  { %538 = vmatpush.msra.mxu0 %v489_v38  ;;  %513 = vmatpush.msrb.mxu3 %v449_v2  ;;  %v438_v38 = vld [vmem:[#allocation7 + $0x18] sm:$0xff]  ;;  %v641_v2 = vld [vmem:[#allocation8 + $0x60] sm:$0xff] }
  0x51   :  { %600 = vmatpush.msra.mxu2 %v482_v63  ;;  %571 = vmatpush.msra.mxu1 %v450_v3  ;;  %v656_v3 = vld [vmem:[#allocation8 + $0xd8] sm:$0xff] }
  0x52   :  { %539 = vmatpush.msra.mxu0 %v487_v44  ;;  %514 = vmatpush.msrb.mxu3 %v447_v8  ;;  %v305_v44 = vld [vmem:[%s1109_s4] sm:$0x3] }
  0x53   :  { %601 = vmatpush.msra.mxu2 %v480_v7  ;;  %572 = vmatpush.msra.mxu1 %v448_v19  ;;  %v1079_v48 = vperm.slane %v305_v44, 0  ;;  %v654_v19 = vld [vmem:[#allocation8 + $0xc8] sm:$0xff] }
  0x54   :  { %540 = vmatpush.msra.mxu0 %v485_v52  ;;  %515 = vmatpush.msrb.mxu3 %v445_v21 }
  0x55   :  { %602 = vmatpush.msra.mxu2 %v478_v20  ;;  %v638_v20 = vld [vmem:[#allocation8 + $0x48] sm:$0xff] }
  0x56   :  { %541 = vmatpush.msra.mxu0 %v483_v56 }
  0x58   :  { %542 = vmatpush.msra.mxu0 %v481_v62 }
  0x5a   :  { %543 = vmatpush.msra.mxu0 %v479_v6 }
  0x5c   :  { %544 = vmatpush.msra.mxu0 %v477_v18 }
  0x98   :  { %v149_v22 = vpop.f32.mrf.mxu0 }
  0x99   :  { %v178_v23 = vpop.f32.mrf.mxu1  ;;  %v225_v27 = vadd.f32 %v1054_v14, %v149_v22  ;;  %v475_v22 = vld [vmem:[#allocation7 + $0x140] sm:$0xff] }
  0x9a   :  { %v226_v28 = vadd.f32 %v1056_v15, %v178_v23  ;;  %v446_v23 = vld [vmem:[#allocation7 + $0x58] sm:$0xff]  ;;  %545 = vmatpush.msra.mxu0 %v475_v22  ;;  %v653_v22 = vld [vmem:[#allocation8 + $0xc0] sm:$0xff] }
  0x9b   :  { %v233_v32 = vmax.f32 %v225_v27, 0.0  ;;  %573 = vmatpush.msra.mxu1 %v446_v23  ;;  %v441_v27 = vld [vmem:[#allocation7 + $0x30] sm:$0xff]  ;;  %v637_v23 = vld [vmem:[#allocation8 + $0x40] sm:$0xff] }
  0x9c   :  { %v234_v33 = vmax.f32 %v226_v28, 0.0  ;;  %546 = vmatpush.msra.mxu0 %v473_v24  ;;  %v471_v28 = vld [vmem:[#allocation7 + $0x120] sm:$0xff] }
  0x9d   :  { %327 = vmatmul.f32.vlgmr.msra.gmra.mxu3 %v233_v32  ;;  %385 = vmatmul.f32.vlgmr.msrb.gmra.mxu1 %v233_v32  ;;  %v469_v32 = vld [vmem:[#allocation7 + $0x110] sm:$0xff] }
  0x9e   :  { %414 = vmatmul.f32.vlgmr.msrb.gmra.mxu2 %v234_v33  ;;  %356 = vmatmul.f32.vlgmr.msrb.gmra.mxu0 %v234_v33  ;;  %v440_v33 = vld [vmem:[#allocation7 + $0x28] sm:$0xff] }
  0x9f   :  { %574 = vmatpush.msra.mxu1 %v444_v25  ;;  %547 = vmatpush.msra.mxu0 %v471_v28 }
  0xa0   :  { %v152_v42 = vpop.f32.mrf.mxu0 }
  0xa1   :  { %v181_v43 = vpop.f32.mrf.mxu1  ;;  %v227_v46 = vadd.f32 %v1054_v14, %v152_v42  ;;  %575 = vmatpush.msra.mxu1 %v442_v29  ;;  %548 = vmatpush.msra.mxu0 %v469_v32  ;;  %v651_v32 = vld [vmem:[#allocation8 + $0xb0] sm:$0xff] }
  0xa2   :  { %v228_v47 = vadd.f32 %v1056_v15, %v181_v43  ;;  %v1066_v17 = vpop.f32.mrf.mxu2 }
  0xa3   :  { %v235_v50 = vmax.f32 %v227_v46, 0.0  ;;  %576 = vmatpush.msra.mxu1 %v440_v33  ;;  %549 = vmatpush.msra.mxu0 %v467_v37 }
  0xa4   :  { %v236_v51 = vmax.f32 %v228_v47, 0.0  ;;  %v1077_v47 = vperm.slane %v305_v44, 1 }
  0xa5   :  { %330 = vmatmul.f32.gmra.mxu3 %v235_v50  ;;  %388 = vmatmul.f32.gmra.mxu1 %v235_v50  ;;  %v659_v50 = vld [vmem:[#allocation8 + $0xf0] sm:$0xff] }
  0xa6   :  { %417 = vmatmul.f32.gmra.mxu2 %v236_v51  ;;  %359 = vmatmul.f32.gmra.mxu0 %v236_v51  ;;  %v644_v51 = vld [vmem:[#allocation8 + $0x78] sm:$0xff] }
  0xa7   :  { %577 = vmatpush.msra.mxu1 %v438_v38  ;;  %690 = vmatpush.msrb.mxu0 %v660_v49 }
  0xa8   :  { %v155_v60 = vpop.f32.mrf.mxu0 }
  0xa9   :  { %v184_v61 = vpop.f32.mrf.mxu1  ;;  %v229_v0 = vadd.f32 %v1054_v14, %v155_v60  ;;  %578 = vmatpush.msra.mxu1 %v436_v41  ;;  %691 = vmatpush.msrb.mxu0 %v659_v50 }
  0xaa   :  { %v230_v1 = vadd.f32 %v1056_v15, %v184_v61  ;;  %v1068_v34 = vpop.f32.mrf.mxu2 }
  0xab   :  { %v237_v4 = vmax.f32 %v229_v0, 0.0  ;;  %787 = vmatpush.msrb.mxu1 %v660_v49  ;;  %692 = vmatpush.msrb.mxu0 %v658_v57  ;;  %v649_v49 = vld [vmem:[#allocation8 + $0xa0] sm:$0xff] }
  0xac   :  { %v238_v5 = vmax.f32 %v230_v1, 0.0  ;;  %v657_v1 = vld [vmem:[#allocation8 + $0xe0] sm:$0xff] }
  0xad   :  { %333 = vmatmul.f32.gmra.mxu3 %v237_v4  ;;  %391 = vmatmul.f32.gmra.mxu1 %v237_v4  ;;  %v640_v4 = vld [vmem:[#allocation8 + $0x58] sm:$0xff] }
  0xae   :  { %420 = vmatmul.f32.gmra.mxu2 %v238_v5  ;;  %362 = vmatmul.f32.gmra.mxu0 %v238_v5 }
  0xaf   :  { %788 = vmatpush.msrb.mxu1 %v659_v50  ;;  %693 = vmatpush.msrb.mxu0 %v657_v1  ;;  %v648_v50 = vld [vmem:[#allocation8 + $0x98] sm:$0xff] }
  0xb0   :  { %v158_v9 = vpop.f32.mrf.mxu0 }
  0xb1   :  { %v187_v10 = vpop.f32.mrf.mxu1  ;;  %v231_v11 = vadd.f32 %v1054_v14, %v158_v9  ;;  %v476_v14 = vld [vmem:[#allocation7 + $0x148] sm:$0xff]  ;;  %789 = vmatpush.msrb.mxu1 %v658_v57  ;;  %v655_v9 = vld [vmem:[#allocation8 + $0xd0] sm:$0xff]  ;;  %694 = vmatpush.msrb.mxu0 %v656_v3 }
  0xb2   :  { %v232_v12 = vadd.f32 %v1056_v15, %v187_v10  ;;  %v443_v15 = vld [vmem:[#allocation7 + $0x40] sm:$0xff]  ;;  %603 = vmatpush.msra.mxu2 %v476_v14  ;;  %v1070_v42 = vpop.f32.mrf.mxu2  ;;  %v639_v10 = vld [vmem:[#allocation8 + $0x50] sm:$0xff]  ;;  %v630_v57 = vld [vmem:[#allocation8 + $0x8] sm:$0xff] }
  0xb3   :  { %v239_v13 = vmax.f32 %v231_v11, 0.0  ;;  %516 = vmatpush.msrb.mxu3 %v443_v15  ;;  %790 = vmatpush.msrb.mxu1 %v657_v1 }
  0xb4   :  { %v240_v16 = vmax.f32 %v232_v12, 0.0  ;;  %604 = vmatpush.msra.mxu2 %v474_v26  ;;  %695 = vmatpush.msrb.mxu0 %v655_v9  ;;  %v652_v26 = vld [vmem:[#allocation8 + $0xb8] sm:$0xff] }
  0xb5   :  { %336 = vmatmul.f32.gmra.mxu3 %v239_v13  ;;  %394 = vmatmul.f32.gmra.mxu1 %v239_v13 }
  0xb6   :  { %423 = vmatmul.f32.gmra.mxu2 %v240_v16  ;;  %365 = vmatmul.f32.gmra.mxu0 %v240_v16 }
  0xb7   :  { %517 = vmatpush.msrb.mxu3 %v441_v27  ;;  %605 = vmatpush.msra.mxu2 %v472_v30 }
  0xb8   :  { %791 = vmatpush.msrb.mxu1 %v656_v3  ;;  %696 = vmatpush.msrb.mxu0 %v654_v19 }
  0xb9   :  { %518 = vmatpush.msrb.mxu3 %v439_v31  ;;  %606 = vmatpush.msra.mxu2 %v470_v35 }
  0xba   :  { %v1072_v43 = vpop.f32.mrf.mxu2  ;;  %792 = vmatpush.msrb.mxu1 %v655_v9  ;;  %697 = vmatpush.msrb.mxu0 %v653_v22 }
  0xbb   :  { %519 = vmatpush.msrb.mxu3 %v437_v36  ;;  %607 = vmatpush.msra.mxu2 %v468_v39 }
  0xbc   :  { %793 = vmatpush.msrb.mxu1 %v654_v19  ;;  %698 = vmatpush.msrb.mxu0 %v652_v26 }
  0xbd   :  { %520 = vmatpush.msrb.mxu3 %v435_v40  ;;  %661 = vmatpush.msrb.mxu2 %v644_v51 }
  0xbe   :  { %794 = vmatpush.msrb.mxu1 %v653_v22  ;;  %699 = vmatpush.msrb.mxu0 %v651_v32 }
  0xbf   :  { %771 = vmatpush.msra.mxu3 %v644_v51  ;;  %662 = vmatpush.msrb.mxu2 %v643_v54  ;;  %v633_v51 = vld [vmem:[#allocation8 + $0x20] sm:$0xff] }
  0xc0   :  { %795 = vmatpush.msrb.mxu1 %v652_v26 }
  0xc1   :  { %772 = vmatpush.msra.mxu3 %v643_v54  ;;  %663 = vmatpush.msrb.mxu2 %v642_v58  ;;  %v646_v54 = vld [vmem:[#allocation8 + $0x88] sm:$0xff] }
  0xc2   :  { %796 = vmatpush.msrb.mxu1 %v651_v32 }
  0xc3   :  { %773 = vmatpush.msra.mxu3 %v642_v58  ;;  %664 = vmatpush.msrb.mxu2 %v641_v2  ;;  %v629_v58 = vld [vmem:[#allocation8] sm:$0xff] }
  0xc5   :  { %774 = vmatpush.msra.mxu3 %v641_v2  ;;  %665 = vmatpush.msrb.mxu2 %v640_v4 }
  0xc7   :  { %775 = vmatpush.msra.mxu3 %v640_v4  ;;  %666 = vmatpush.msrb.mxu2 %v639_v10 }
  0xc9   :  { %776 = vmatpush.msra.mxu3 %v639_v10  ;;  %667 = vmatpush.msrb.mxu2 %v638_v20 }
  0xcb   :  { %777 = vmatpush.msra.mxu3 %v638_v20  ;;  %668 = vmatpush.msrb.mxu2 %v637_v23 }
  0xcd   :  { %778 = vmatpush.msra.mxu3 %v637_v23 }
 0x11a   :  { %v386_v45 = vpop.f32.mrf.mxu1 }
 0x11b   :  { %v357_v46 = vpop.f32.mrf.mxu0  ;;  %v387_v52 = vadd.f32 %v386_v45, %v1077_v47  ;;  %v636_v45 = vld [vmem:[#allocation8 + $0x38] sm:$0xff] }
 0x11c   :  { %669 = vmatpush.msrb.mxu2 %v636_v45  ;;  %779 = vmatpush.msra.mxu3 %v636_v45  ;;  %v814_v45 = vld [vmem:[%s1113_s8] ss:$0 sm:$0xff]  ;;  %s961_s8 = smov [#allocation10]  }
 0x11d   :  { %s739_s22 = sshll.u32 %s961_s8, 4  ;;  %s740_s22 = int_to_ptr.vmem [resolvable:$true] %s739_s22 }
 0x120   :  { %v328_v53 = vpop.f32.mrf.mxu3 }
 0x121   :  { %v329_v55 = vadd.f32 %v328_v53, %v1079_v48  ;;  %v415_v56 = vpop.f32.mrf.mxu2  ;;  %v632_v53 = vld [vmem:[#allocation8 + $0x18] sm:$0xff] }
 0x122   :  { %v416_v59 = vadd.f32 %v415_v56, %v387_v52  ;;  %v389_v60 = vpop.f32.mrf.mxu1  ;;  %v647_v52 = vld [vmem:[#allocation8 + $0x90] sm:$0xff]  ;;  %v645_v56 = vld [vmem:[#allocation8 + $0x80] sm:$0xff] }
 0x123   :  { %v358_v61 = vadd.f32 %v357_v46, %v329_v55  ;;  %v360_v63 = vpop.f32.mrf.mxu0  ;;  %v390_v5 = vadd.f32 %v389_v60, %v1077_v47  ;;  %v650_v46 = vld [vmem:[#allocation8 + $0xa8] sm:$0xff]  ;;  %v631_v55 = vld [vmem:[#allocation8 + $0x10] sm:$0xff] }
 0x124   :  { %v428_v62 = vmax.f32 %v416_v59, 0.0  ;;  %700 = vmatpush.msrb.mxu0 %v650_v46  ;;  %797 = vmatpush.msrb.mxu1 %v650_v46  ;;  %v499_v59 = vld [vmem:[%s1111_s6] sm:$0x3] }
 0x125   :  { %v427_v0 = vmax.f32 %v358_v61, 0.0  ;;  %v502_v60 = vperm.slane %v499_v59, 1 }
 0x126   :  { %550 = vmatmul.f32.vlgmr.msra.gmra.mxu0 %v428_v62  ;;  %608 = vmatmul.f32.vlgmr.msra.gmra.mxu2 %v428_v62 }
 0x127   :  { %521 = vmatmul.f32.vlgmr.msrb.gmra.mxu3 %v427_v0  ;;  %579 = vmatmul.f32.vlgmr.msra.gmra.mxu1 %v427_v0 }
 0x128   :  { %v331_v6 = vpop.f32.mrf.mxu3  ;;  %701 = vmatpush.msrb.mxu0 %v649_v49  ;;  %798 = vmatpush.msrb.mxu1 %v649_v49 }
 0x129   :  { %v332_v7 = vadd.f32 %v331_v6, %v1079_v48  ;;  %v418_v8 = vpop.f32.mrf.mxu2 }
 0x12a   :  { %v419_v11 = vadd.f32 %v418_v8, %v390_v5  ;;  %v392_v13 = vpop.f32.mrf.mxu1  ;;  %702 = vmatpush.msrb.mxu0 %v648_v50  ;;  %799 = vmatpush.msrb.mxu1 %v648_v50 }
 0x12b   :  { %v361_v12 = vadd.f32 %v360_v63, %v332_v7  ;;  %v363_v21 = vpop.f32.mrf.mxu0  ;;  %v393_v14 = vadd.f32 %v392_v13, %v1077_v47  ;;  %v501_v63 = vperm.slane %v499_v59, 0 }
 0x12c   :  { %v430_v16 = vmax.f32 %v419_v11, 0.0  ;;  %703 = vmatpush.msrb.mxu0 %v647_v52  ;;  %800 = vmatpush.msrb.mxu1 %v647_v52 }
 0x12d   :  { %v429_v18 = vmax.f32 %v361_v12, 0.0 }
 0x12e   :  { %553 = vmatmul.f32.gmra.mxu0 %v430_v16  ;;  %611 = vmatmul.f32.gmra.mxu2 %v430_v16 }
 0x12f   :  { %524 = vmatmul.f32.gmra.mxu3 %v429_v18  ;;  %582 = vmatmul.f32.gmra.mxu1 %v429_v18 }
 0x130   :  { %v334_v15 = vpop.f32.mrf.mxu3  ;;  %704 = vmatpush.msrb.mxu0 %v646_v54  ;;  %801 = vmatpush.msrb.mxu1 %v646_v54 }
 0x131   :  { %v335_v24 = vadd.f32 %v334_v15, %v1079_v48  ;;  %v421_v25 = vpop.f32.mrf.mxu2 }
 0x132   :  { %v422_v27 = vadd.f32 %v421_v25, %v393_v14  ;;  %v395_v31 = vpop.f32.mrf.mxu1  ;;  %705 = vmatpush.msrb.mxu0 %v645_v56  ;;  %802 = vmatpush.msrb.mxu1 %v645_v56 }
 0x133   :  { %v364_v28 = vadd.f32 %v363_v21, %v335_v24  ;;  %v396_v33 = vadd.f32 %v395_v31, %v1077_v47  ;;  %v366_v36 = vpop.f32.mrf.mxu0  ;;  %v635_v47 = vld [vmem:[#allocation8 + $0x30] sm:$0xff] }
 0x134   :  { %v432_v29 = vmax.f32 %v422_v27, 0.0  ;;  %670 = vmatpush.msrb.mxu2 %v635_v47  ;;  %780 = vmatpush.msra.mxu3 %v635_v47 }
 0x135   :  { %v431_v30 = vmax.f32 %v364_v28, 0.0 }
 0x136   :  { %556 = vmatmul.f32.gmra.mxu0 %v432_v29  ;;  %614 = vmatmul.f32.gmra.mxu2 %v432_v29 }
 0x137   :  { %527 = vmatmul.f32.gmra.mxu3 %v431_v30  ;;  %585 = vmatmul.f32.gmra.mxu1 %v431_v30 }
 0x138   :  { %v337_v35 = vpop.f32.mrf.mxu3 }
 0x139   :  { %v338_v37 = vadd.f32 %v337_v35, %v1079_v48  ;;  %v424_v38 = vpop.f32.mrf.mxu2  ;;  %v634_v48 = vld [vmem:[#allocation8 + $0x28] sm:$0xff] }
 0x13a   :  { %v425_v39 = vadd.f32 %v424_v38, %v396_v33  ;;  %671 = vmatpush.msrb.mxu2 %v634_v48  ;;  %781 = vmatpush.msra.mxu3 %v634_v48 }
 0x13b   :  { %v367_v40 = vadd.f32 %v366_v36, %v338_v37 }
 0x13c   :  { %v434_v41 = vmax.f32 %v425_v39, 0.0  ;;  %672 = vmatpush.msrb.mxu2 %v633_v51  ;;  %782 = vmatpush.msra.mxu3 %v633_v51 }
 0x13d   :  { %v433_v44 = vmax.f32 %v367_v40, 0.0 }
 0x13e   :  { %559 = vmatmul.f32.gmra.mxu0 %v434_v41  ;;  %617 = vmatmul.f32.gmra.mxu2 %v434_v41 }
 0x13f   :  { %530 = vmatmul.f32.gmra.mxu3 %v433_v44  ;;  %588 = vmatmul.f32.gmra.mxu1 %v433_v44 }
 0x140   :  { %673 = vmatpush.msrb.mxu2 %v632_v53  ;;  %783 = vmatpush.msra.mxu3 %v632_v53 }
 0x142   :  { %674 = vmatpush.msrb.mxu2 %v631_v55  ;;  %784 = vmatpush.msra.mxu3 %v631_v55 }
 0x144   :  { %675 = vmatpush.msrb.mxu2 %v630_v57  ;;  %785 = vmatpush.msra.mxu3 %v630_v57 }
 0x146   :  { %676 = vmatpush.msrb.mxu2 %v629_v58  ;;  %786 = vmatpush.msra.mxu3 %v629_v58 }
 0x1a3   :  { %v551_v62 = vpop.f32.mrf.mxu0 }
 0x1a4   :  { %v580_v61 = vpop.f32.mrf.mxu1 }
 0x1a5   :  { %v581_v0 = vadd.f32 %v580_v61, %v502_v60 }
 0x1a9   :  { %v609_v1 = vpop.f32.mrf.mxu2 }
 0x1aa   :  { %v610_v2 = vadd.f32 %v609_v1, %v581_v0  ;;  %v522_v3 = vpop.f32.mrf.mxu3 }
 0x1ab   :  { %v523_v4 = vadd.f32 %v522_v3, %v501_v63  ;;  %v554_v9 = vpop.f32.mrf.mxu0 }
 0x1ac   :  { %v622_v5 = vmax.f32 %v610_v2, 0.0  ;;  %v583_v6 = vpop.f32.mrf.mxu1 }
 0x1ad   :  { %v552_v7 = vadd.f32 %v551_v62, %v523_v4  ;;  %v584_v10 = vadd.f32 %v583_v6, %v502_v60 }
 0x1ae   :  { %706 = vmatmul.f32.vlgmr.msrb.gmra.mxu0 %v622_v5 }
 0x1af   :  { %v621_v8 = vmax.f32 %v552_v7, 0.0 }
 0x1b1   :  { %v612_v11 = vpop.f32.mrf.mxu2  ;;  %677 = vmatmul.f32.vlgmr.msrb.gmra.mxu2 %v621_v8 }
 0x1b2   :  { %v613_v12 = vadd.f32 %v612_v11, %v584_v10  ;;  %v525_v13 = vpop.f32.mrf.mxu3 }
 0x1b3   :  { %v526_v16 = vadd.f32 %v525_v13, %v501_v63  ;;  %v557_v14 = vpop.f32.mrf.mxu0 }
 0x1b4   :  { %v624_v18 = vmax.f32 %v613_v12, 0.0  ;;  %v586_v19 = vpop.f32.mrf.mxu1 }
 0x1b5   :  { %v555_v20 = vadd.f32 %v554_v9, %v526_v16  ;;  %v587_v22 = vadd.f32 %v586_v19, %v502_v60 }
 0x1b6   :  { %709 = vmatmul.f32.gmra.mxu0 %v624_v18 }
 0x1b7   :  { %v623_v21 = vmax.f32 %v555_v20, 0.0 }
 0x1b9   :  { %v615_v23 = vpop.f32.mrf.mxu2  ;;  %680 = vmatmul.f32.vlgmr.msra.gmra.mxu3 %v623_v21 }
 0x1ba   :  { %v616_v15 = vadd.f32 %v615_v23, %v587_v22  ;;  %v528_v24 = vpop.f32.mrf.mxu3 }
 0x1bb   :  { %v529_v25 = vadd.f32 %v528_v24, %v501_v63  ;;  %v560_v36 = vpop.f32.mrf.mxu0 }
 0x1bc   :  { %v626_v26 = vmax.f32 %v616_v15, 0.0  ;;  %v589_v27 = vpop.f32.mrf.mxu1 }
 0x1bd   :  { %v558_v28 = vadd.f32 %v557_v14, %v529_v25  ;;  %v590_v30 = vadd.f32 %v589_v27, %v502_v60 }
 0x1be   :  { %712 = vmatmul.f32.vlgmr.msrb.gmra.mxu1 %v626_v26 }
 0x1bf   :  { %v625_v29 = vmax.f32 %v558_v28, 0.0 }
 0x1c1   :  { %v618_v31 = vpop.f32.mrf.mxu2  ;;  %683 = vmatmul.f32.gmra.mxu3 %v625_v29 }
 0x1c2   :  { %v619_v32 = vadd.f32 %v618_v31, %v590_v30  ;;  %v531_v33 = vpop.f32.mrf.mxu3 }
 0x1c3   :  { %v532_v35 = vadd.f32 %v531_v33, %v501_v63 }
 0x1c4   :  { %v628_v37 = vmax.f32 %v619_v32, 0.0 }
 0x1c5   :  { %v561_v38 = vadd.f32 %v560_v36, %v532_v35 }
 0x1c6   :  { %715 = vmatmul.f32.gmra.mxu1 %v628_v37 }
 0x1c7   :  { %v627_v39 = vmax.f32 %v561_v38, 0.0 }
 0x1c9   :  { %686 = vmatmul.f32.gmra.mxu3 %v627_v39 }
 0x22b   :  { %v707_v40 = vpop.f32.mrf.mxu0 }
 0x233   :  { %v710_v50 = vpop.f32.mrf.mxu0 }
 0x234   :  { %v678_v41 = vpop.f32.mrf.mxu2 }
 0x235   :  { %v679_v44 = vadd.f32 %v678_v41, %v1066_v17 }
 0x237   :  { %v708_v46 = vadd.f32 %v707_v40, %v679_v44 }
 0x239   :  { %v723_v47 = vadd.f32 %v814_v45, %v708_v46 }
 0x23b   :  { %815 = vtanh.f32 %v723_v47  ;;  %v713_v54 = vpop.f32.mrf.mxu1 }
 0x23c   :  { %v681_v49 = vpop.f32.mrf.mxu3 }
 0x23d   :  { %v682_v48 = vadd.f32 %v681_v49, %v1068_v34 }
 0x23f   :  { %v711_v51 = vadd.f32 %v710_v50, %v682_v48 }
 0x241   :  { %v816_v52 = vpop.eup %815  ;;  %v724_v53 = vadd.f32 %v814_v45, %v711_v51 }
 0x242   :  { %731 = vst [vmem:[#allocation10] sm:$0xff] %v816_v52 }
 0x243   :  { %817 = vtanh.f32 %v724_v53  ;;  %v716_v61 = vpop.f32.mrf.mxu1 }
 0x244   :  { %v684_v55 = vpop.f32.mrf.mxu3 }
 0x245   :  { %v685_v17 = vadd.f32 %v684_v55, %v1070_v42 }
 0x247   :  { %v714_v56 = vadd.f32 %v713_v54, %v685_v17 }
 0x249   :  { %v818_v57 = vpop.eup %817  ;;  %v725_v58 = vadd.f32 %v814_v45, %v714_v56 }
 0x24a   :  { %732 = vst [vmem:[#allocation10 + $0x8] sm:$0xff] %v818_v57 }
 0x24b   :  { %819 = vtanh.f32 %v725_v58 }
 0x24c   :  { %v687_v59 = vpop.f32.mrf.mxu3 }
 0x24d   :  { %v688_v60 = vadd.f32 %v687_v59, %v1072_v43 }
 0x24f   :  { %v717_v34 = vadd.f32 %v716_v61, %v688_v60 }
 0x251   :  { %v820_v62 = vpop.eup %819  ;;  %v726_v63 = vadd.f32 %v814_v45, %v717_v34 }
 0x252   :  { %733 = vst [vmem:[#allocation10 + $0x10] sm:$0xff] %v820_v62 }
 0x253   :  { %821 = vtanh.f32 %v726_v63 }
 0x259   :  { %v822_v42 = vpop.eup %821 }
 0x25a   :  { %734 = vst [vmem:[#allocation10 + $0x18] sm:$0xff] %v822_v42 }
 0x25b   :  { %747 = dma.vmem_to_hbm [thread:$0]  %s740_s22, 512, %s742_s24, [#allocation4], %s959_s10, %s959_s10, %s960_s11  }
 0x25c   :  { %949 = dma.done.wait [#allocation4], 512  }
 0x25d   :  { %950 = vsyncadd [#allocation4], 4294966784 }
 0x25e   :  { %752 = vsyncpa [#allocation3], 1 }
 0x25f   :  { %753 = vsyncpa [#allocation6], 1 }
 0x260   :  { %754 = vsyncpa [#allocation9], 1 }
 0x261   :  { %755 = vsyncpa [#allocation4], 1 }

</bundles_post_ra>
